<compile_context>
chip_gen: v7x
topology: tpu7x:2x2x1
jax: 0.10.0
libtpu: 0.0.40
codegen_flags: <defaults>
</compile_context>

<pallas_src>
import functools

import jax
import jax.numpy as jnp
from jax.experimental import pallas as pl
from jax.experimental.pallas import tpu as pltpu

CROP = 2          # pixels cropped from each spatial border ("crop2")
POOL_CHECK = 1    # static stand-in for the module-level `poolCheck` global

_SEL_CHUNK = 128  # output columns produced per one-hot selection matmul


# ----------------------------------------------------------------------------- #
# Hardware-aware sizing helpers
# ----------------------------------------------------------------------------- #
def _tpu_info():
    try:
        return pltpu.get_tpu_info()
    except Exception:
        return None


def _vmem_budgets():
    """(vmem_limit_bytes, block_budget_bytes) sized for the detected generation."""
    cap = None
    info = _tpu_info()
    if info is not None:
        try:
            cap = int(getattr(info, "vmem_capacity_bytes"))
        except Exception:
            cap = None
    if cap is None:
        cap = 64 * 1024 * 1024                       # assume tightest (v7x) if unknown
    if cap >= 128 * 1024 * 1024:                     # v5e / v6e: 128 MiB per TC
        return 100 * 1024 * 1024, 56 * 1024 * 1024
    return 48 * 1024 * 1024, 28 * 1024 * 1024        # v7x (64 MiB / TC) or unknown


def _num_tensorcores():
    info = _tpu_info()
    if info is not None:
        for name in ("num_cores", "core_count", "num_tensorcores", "tensorcore_count"):
            v = getattr(info, name, None)
            try:
                v = int(v)
            except (TypeError, ValueError):
                continue
            if v > 0:
                return v
    return 1   # conservative default: never shrink blocks on single-TC parts


def _largest_divisor_leq(n, k):
    k = max(1, min(n, k))
    while n % k:
        k -= 1
    return k


def _choose_nc_tiles(N, C, unit_in_bytes, unit_out_bytes, budget, min_steps):
    """Largest (tn, tc) whose double-buffered (in + out) blocks fit the budget."""
    per_unit = 2 * (unit_in_bytes + unit_out_bytes)      # x2: Pallas double-buffers
    max_units = max(1, int(budget // per_unit))
    tc = _largest_divisor_leq(C, min(C, max_units))       # full C first: contiguous DMA
    tn = _largest_divisor_leq(N, min(N, max(1, max_units // tc)))
    # v7x megacore: guarantee >= min_steps steps in the TOTAL grid when possible.
    while min_steps > 1 and (N // tn) * (C // tc) < min_steps:
        if tn > 1:
            tn = _largest_divisor_leq(N, max(1, tn // 2))
        elif tc > 1:
            tc = _largest_divisor_leq(C, max(1, tc // 2))
        else:
            break
    return tn, tc


def _choose_h_tile(Ho, Wo, itemsize, budget):
    """Output-row tile for the (rare) oversized-plane fallback (tn = tc = 1)."""
    per_row = 2 * (2 * (2 * Wo) + Wo) * itemsize          # double-buffered in + out
    th = max(1, min(Ho, int(budget // per_row)))
    if th >= Ho:
        return Ho
    th = max(8, (th // 8) * 8)                            # blocked sublane dim: mult of 8
    d = th
    while d > 8 and Ho % d:                               # prefer a divisor of Ho
        d -= 8
    if d >= 8 and Ho % d == 0:
        th = d
    return min(th, Ho)


# ----------------------------------------------------------------------------- #
# Kernels
# ----------------------------------------------------------------------------- #
def _crop_pool_kernel(x_ref, o_ref, *, h_off, w_off):
    """Fused crop + 2x2/stride-2 max-pool on an NCHW tile.

    x_ref: (tn, tc, Hi, Wi) VMEM tile (uncropped when h_off == w_off == CROP).
    o_ref: (tn, tc, th, Wo).
    """
    tn, tc = x_ref.shape[0], x_ref.shape[1]
    th, Wo = o_ref.shape[2], o_ref.shape[3]

    # --- vertical: crop + pair-max.  H is the sublane dim in NCHW, so the two
    # stride-2 loads are plain strided vlds (no lane shuffles).
    top = x_ref[:, :, pl.ds(h_off, th, stride=2), :]
    bot = x_ref[:, :, pl.ds(h_off + 1, th, stride=2), :]
    hmax = jnp.maximum(top, bot).astype(jnp.float32)       # (tn, tc, th, Wi)

    # --- horizontal: crop + pair-max + stride-2 compaction on the lane axis.
    # Lane-strided gathers are avoided entirely: each chunk of <=128 output columns
    # is produced by two tiny one-hot matmuls on the otherwise idle MXU, which copy
    # the even / odd source column exactly (a single 1.0*x term, f32 accumulation).
    # Chunking keeps the MXU FLOPs per output element <= ~1k, far under the HBM
    # roofline on v5e/v6e/v7x, so the kernel stays DMA-bound.
    # NOTE: assumes finite activations (an Inf/NaN anywhere in a row would leak
    # through the 0-weighted terms of the one-hot matmul).
    for w0 in range(0, Wo, _SEL_CHUNK):
        wk = min(_SEL_CHUNK, Wo - w0)
        lo = w_off + 2 * w0
        sub = hmax[:, :, :, lo:lo + 2 * wk]                 # static lane-offset slice
        rows = sub.reshape(tn * tc * th, 2 * wk)            # collapse major dims only
        src = jax.lax.broadcasted_iota(jnp.int32, (2 * wk, wk), 0)
        dst = jax.lax.broadcasted_iota(jnp.int32, (2 * wk, wk), 1)
        s_even = (src == 2 * dst).astype(jnp.float32)
        s_odd = (src == 2 * dst + 1).astype(jnp.float32)
        even = jnp.dot(rows, s_even, preferred_element_type=jnp.float32)
        odd = jnp.dot(rows, s_odd, preferred_element_type=jnp.float32)
        blk = jnp.maximum(even, odd).reshape(tn, tc, th, wk)
        o_ref[:, :, :, w0:w0 + wk] = blk.astype(o_ref.dtype)


def _crop_kernel(x_ref, o_ref):
    """Crop-only path (POOL_CHECK != 1).  NCHW tile, crop done in-kernel."""
    hc, wc = o_ref.shape[2], o_ref.shape[3]
    o_ref[...] = x_ref[:, :, pl.ds(CROP, hc), pl.ds(CROP, wc)]


# ----------------------------------------------------------------------------- #
# Wrapper
# ----------------------------------------------------------------------------- #
def crop_map(x):
    """Forward pass of cropMap.  x: (N, C, H, W) float array (NCHW, as in torch)."""
    N, C, H, W = x.shape
    Hc, Wc = H - 2 * CROP, W - 2 * CROP
    assert Hc > 0 and Wc > 0, "spatial dims too small for crop2"
    itemsize = jnp.dtype(x.dtype).itemsize

    vmem_limit, budget = _vmem_budgets()
    min_steps = 2 if _num_tensorcores() >= 2 else 1

    def cparams(sem):
        return pltpu.CompilerParams(dimension_semantics=sem,
                                    vmem_limit_bytes=vmem_limit)

    if POOL_CHECK != 1:
        # Crop-only path (dead with POOL_CHECK == 1), budget-checked.
        unit_in, unit_out = H * W * itemsize, Hc * Wc * itemsize
        if 2 * (unit_in + unit_out) > budget:
            # TODO(synk): gigantic single planes exceed the VMEM budget; plain XLA
            #             slice fallback instead of a Pallas copy kernel.
            return jax.lax.slice(x, (0, 0, CROP, CROP), (N, C, CROP + Hc, CROP + Wc))
        tn, tc = _choose_nc_tiles(N, C, unit_in, unit_out, budget, min_steps)
        return pl.pallas_call(
            _crop_kernel,
            out_shape=jax.ShapeDtypeStruct((N, C, Hc, Wc), x.dtype),
            grid_spec=pltpu.PrefetchScalarGridSpec(
                num_scalar_prefetch=0,
                grid=(N // tn, C // tc),
                in_specs=[pl.BlockSpec((tn, tc, H, W), lambda n, c: (n, c, 0, 0))],
                out_specs=pl.BlockSpec((tn, tc, Hc, Wc), lambda n, c: (n, c, 0, 0)),
            ),
            compiler_params=cparams(("parallel", "parallel")),
        )(x)

    Ho, Wo = Hc // 2, Wc // 2
    assert Ho > 0 and Wo > 0, "spatial dims too small for 2x2 max-pool"
    unit_in, unit_out = H * W * itemsize, Ho * Wo * itemsize

    if 2 * (unit_in + unit_out) <= budget:
        # Main path: x consumed directly from HBM in NCHW, crop folded into the
        # kernel (the 2-px borders ride along in the block DMA; no wrapper pass).
        tn, tc = _choose_nc_tiles(N, C, unit_in, unit_out, budget, min_steps)
        kernel = functools.partial(_crop_pool_kernel, h_off=CROP, w_off=CROP)
        return pl.pallas_call(
            kernel,
            out_shape=jax.ShapeDtypeStruct((N, C, Ho, Wo), x.dtype),
            grid_spec=pltpu.PrefetchScalarGridSpec(
                num_scalar_prefetch=0,
                grid=(N // tn, C // tc),
                in_specs=[pl.BlockSpec((tn, tc, H, W), lambda n, c: (n, c, 0, 0))],
                out_specs=pl.BlockSpec((tn, tc, Ho, Wo), lambda n, c: (n, c, 0, 0)),
            ),
            compiler_params=cparams(("parallel", "parallel")),
        )(x)

    # Fallback for planes too large for a whole-plane VMEM block: crop once in the
    # wrapper (one extra HBM pass, still no transpose) so the H axis tiles with
    # plain blocked specs, then pool with the same kernel at zero offsets.
    th = _choose_h_tile(Ho, Wo, itemsize, budget)
    xc = jax.lax.slice(x, (0, 0, CROP, CROP), (N, C, CROP + 2 * Ho, CROP + 2 * Wo))
    kernel = functools.partial(_crop_pool_kernel, h_off=0, w_off=0)
    return pl.pallas_call(
        kernel,
        out_shape=jax.ShapeDtypeStruct((N, C, Ho, Wo), x.dtype),
        grid_spec=pltpu.PrefetchScalarGridSpec(
            num_scalar_prefetch=0,
            grid=(N, C, pl.cdiv(Ho, th)),
            in_specs=[pl.BlockSpec((1, 1, 2 * th, 2 * Wo),
                                   lambda n, c, h: (n, c, h, 0))],
            out_specs=pl.BlockSpec((1, 1, th, Wo), lambda n, c, h: (n, c, h, 0)),
        ),
        compiler_params=cparams(("parallel", "parallel", "parallel")),
    )(xc)


# ----------------------------------------------------------------------------- #
# Pure-JAX reference + self-test
# ----------------------------------------------------------------------------- #
def _reference(x):
    xc = x[:, :, CROP:-CROP, CROP:-CROP]
    if POOL_CHECK != 1:
        return xc
    N, C, Hc, Wc = xc.shape
    Ho, Wo = Hc // 2, Wc // 2
    xr = xc[:, :, :Ho * 2, :Wo * 2].reshape(N, C, Ho, 2, Wo, 2)
    return xr.max(axis=5).max(axis=3)


if __name__ == "__main__":
    key = jax.random.PRNGKey(0)
    x = jax.random.normal(key, (2, 4, 16, 16), dtype=jnp.float32)

    out = jax.block_until_ready(crop_map(x))

    ref = _reference(x)
    assert out.shape == ref.shape, (out.shape, ref.shape)
    assert jnp.allclose(out, ref), "Pallas kernel mismatch vs reference"
    print("KERNEL_OK")
</pallas_src>

<mosaic_0001>
module attributes {stable_mosaic.version = 11 : i64} {
  func.func @_crop_pool_kernel(%arg0: i32, %arg1: i32, %arg2: memref<2x4x16x16xf32, #tpu.memory_space<vmem>>, %arg3: memref<2x4x6x6xf32, #tpu.memory_space<vmem>>) attributes {dimension_semantics = [#tpu.dimension_semantics<parallel>, #tpu.dimension_semantics<parallel>], iteration_bounds = array<i64: 1, 1>, scalar_prefetch = 0 : i64, scratch_operands = 0 : i64, tpu.core_type = #tpu.core_type<tc>, window_params = [{transform_indices = @transform_0, window_bounds = array<i64: 2, 4, 16, 16>}, {transform_indices = @transform_1, window_bounds = array<i64: 2, 4, 6, 6>}]} {
    %c0 = arith.constant 0 : index
    %c0_0 = arith.constant 0 : index
    %c2 = arith.constant 2 : index
    %c0_1 = arith.constant 0 : index
    %0 = tpu.strided_load %arg2[%c0, %c0_0, %c2, %c0_1] {strides = array<i32: 1, 1, 2, 1>} : memref<2x4x16x16xf32, #tpu.memory_space<vmem>>, vector<2x4x6x16xf32>
    %c0_2 = arith.constant 0 : index
    %c0_3 = arith.constant 0 : index
    %c3 = arith.constant 3 : index
    %c0_4 = arith.constant 0 : index
    %1 = tpu.strided_load %arg2[%c0_2, %c0_3, %c3, %c0_4] {strides = array<i32: 1, 1, 2, 1>} : memref<2x4x16x16xf32, #tpu.memory_space<vmem>>, vector<2x4x6x16xf32>
    %2 = arith.maximumf %0, %1 : vector<2x4x6x16xf32>
    %3 = vector.extract_strided_slice %2 {offsets = [0, 0, 0, 2], sizes = [2, 4, 6, 12], strides = [1, 1, 1, 1]} : vector<2x4x6x16xf32> to vector<2x4x6x12xf32>
    %4 = vector.shape_cast %3 : vector<2x4x6x12xf32> to vector<48x12xf32>
    %5 = tpu.iota {dimensions = array<i32: 0>} : vector<12x6xi32>
    %6 = tpu.iota {dimensions = array<i32: 1>} : vector<12x6xi32>
    %c2_i32 = arith.constant 2 : i32
    %7 = vector.broadcast %c2_i32 : i32 to vector<12x6xi32>
    %8 = arith.muli %7, %6 : vector<12x6xi32>
    %9 = arith.cmpi eq, %5, %8 : vector<12x6xi32>
    %10 = arith.extui %9 : vector<12x6xi1> to vector<12x6xi32>
    %11 = arith.sitofp %10 : vector<12x6xi32> to vector<12x6xf32>
    %c2_i32_5 = arith.constant 2 : i32
    %12 = vector.broadcast %c2_i32_5 : i32 to vector<12x6xi32>
    %13 = arith.muli %12, %6 : vector<12x6xi32>
    %c1_i32 = arith.constant 1 : i32
    %14 = vector.broadcast %c1_i32 : i32 to vector<12x6xi32>
    %15 = arith.addi %13, %14 : vector<12x6xi32>
    %16 = arith.cmpi eq, %5, %15 : vector<12x6xi32>
    %17 = arith.extui %16 : vector<12x6xi1> to vector<12x6xi32>
    %18 = arith.sitofp %17 : vector<12x6xi32> to vector<12x6xf32>
    %cst = arith.constant dense<0.000000e+00> : vector<48x6xf32>
    %19 = tpu.matmul %4, %11, %cst {dimension_numbers = #tpu.dot_dimension_numbers<[1], [0], [0], [1], [0, 0, 1, 1], [], []>} : vector<48x12xf32>, vector<12x6xf32>, vector<48x6xf32> -> vector<48x6xf32>
    %cst_6 = arith.constant dense<0.000000e+00> : vector<48x6xf32>
    %20 = tpu.matmul %4, %18, %cst_6 {dimension_numbers = #tpu.dot_dimension_numbers<[1], [0], [0], [1], [0, 0, 1, 1], [], []>} : vector<48x12xf32>, vector<12x6xf32>, vector<48x6xf32> -> vector<48x6xf32>
    %21 = arith.maximumf %19, %20 : vector<48x6xf32>
    %22 = vector.shape_cast %21 : vector<48x6xf32> to vector<2x4x6x6xf32>
    %c0_7 = arith.constant 0 : index
    %c0_8 = arith.constant 0 : index
    %c0_9 = arith.constant 0 : index
    %c0_10 = arith.constant 0 : index
    %23 = vector.load %arg3[%c0_7, %c0_8, %c0_9, %c0_10] : memref<2x4x6x6xf32, #tpu.memory_space<vmem>>, vector<2x4x6x6xf32>
    tpu.vector_store %arg3[%c0_7, %c0_8, %c0_9, %c0_10], %22 {strides = array<i32>} : memref<2x4x6x6xf32, #tpu.memory_space<vmem>>, vector<2x4x6x6xf32>,
    return
  }
  func.func @transform_0(%arg0: i32, %arg1: i32) -> (i32, i32, i32, i32) {
    %c0_i32 = arith.constant 0 : i32
    %c0_i32_0 = arith.constant 0 : i32
    %c0_i32_1 = arith.constant 0 : i32
    return %arg0, %arg1, %c0_i32, %c0_i32_0 : i32, i32, i32, i32
  }
  func.func @transform_1(%arg0: i32, %arg1: i32) -> (i32, i32, i32, i32) {
    %c0_i32 = arith.constant 0 : i32
    %c0_i32_0 = arith.constant 0 : i32
    %c0_i32_1 = arith.constant 0 : i32
    return %arg0, %arg1, %c0_i32, %c0_i32_0 : i32, i32, i32, i32
  }
}

</mosaic_0001>

<bundles_post_ra>
// kernel: tpu_custom_call.1
= control target key start
LH: loop header
LB: loop body
LE: loop exit
PB: predicated region body
PF: predicated region fallthrough
CT: control target
= control target key end

     0   :  { %6 = vsyncpa [#allocation3], 0  ;;  %s910_s6 = smov [#allocation2]   ;;  %s1078_s0 = inlined_call_operand.hbm [shape: f32[2,4,16,16], index: 0, kind: input, shape index: {}]   ;;  %s1079_s1 = inlined_call_operand.vmem [shape: f32[2,4,6,6], index: 1, kind: output, shape index: {}]  }
   0x1   :  { %s12_s7 = sshll.u32 %s910_s6, 4  ;;  %s886_s10 = scalar_lea.hbm %s1078_s0, 2048  ;;  %s13_s7 = int_to_ptr.vmem [resolvable:$true] %s12_s7 }
   0x2   :  { %p887_p0 = scmp.ne.s32.totalorder %s1078_s0, %s886_s10  ;;  %p890_p1 = scmp.lt.u32.totalorder %s886_s10, %s1078_s0 }
   0x4   :  { %p892_p2 = pnand %p890_p1, %p887_p0 }
   0x6   :  { %895 = shalt.err (!%p892_p2)
}
   0x7   :  { %s896_s15 = scalar_lea.vmem %s13_s7, 2048  ;;  %p901_p4 = scmp.lt.s32.totalorder %s13_s7, %s13_s7 }
   0x8   :  { %p897_p3 = scmp.ne.s32.totalorder %s13_s7, %s896_s15  ;;  %p902_p5 = scmp.lt.s32.totalorder %s896_s15, %s896_s15 }
   0xa   :  { %p903_p6 = por %p902_p5, %p901_p4 }
   0xc   :  { %p904_p7 = pnand %p903_p6, %p897_p3 }
   0xe   :  { %907 = shalt.err (!%p904_p7)
}
   0xf   :  { %s911_s16 = smov 128   ;;  %s912_s17 = smov 8  }
  0x10   :  { %18 = dma.hbm_to_vmem [thread:$0]  %s1078_s0, 2048, %s13_s7, [#allocation3], %s911_s16, %s911_s16, %s912_s17  }
  0x11   :  { %908 = dma.done.wait [#allocation3], 2048  }
  0x12   :  { %909 = vsyncadd [#allocation3], 4294965248  ;;  %v74_v0 = vlaneseq  ;;  %v913_v1 = vmov 1983009808   ;;  %s914_s0 = smov 126   ;;  %vm344_vm4 = vcmask 1043456  }
  0x13   :  { %v72_v2 = vunpack.c.l.s4 %v913_v1  ;;  %v23_v9 = vld [vmem:[#allocation2 + $0x2] ss:$2 sm:$0x3f]  ;;  %v25_v10 = vld [vmem:[#allocation2 + $0x12] ss:$2 sm:$0x3f] }
  0x14   :  { %v202_v3 = vand.u32 127, %v74_v0  ;;  %v939_v5 = vshrl.u32 %v74_v0, 7  ;;  %v39_v12 = vld [vmem:[#allocation2 + $0x3] ss:$2 sm:$0x3f]  ;;  %vm331_vm7 = vcmask 97280  }
  0x15   :  { %v73_v4 = vunpack.c.0.s8 %v72_v2  ;;  %v41_v13 = vld [vmem:[#allocation2 + $0x13] ss:$2 sm:$0x3f]  ;;  %v54_v14 = vmax.f32 %v23_v9, %v39_v12  ;;  %v27_v16 = vld [vmem:[#allocation2 + $0x22] ss:$2 sm:$0x3f] }
  0x16   :  { %v941_v6 = vmul.u32 2, %v202_v3  ;;  %v944_v7 = vadd.s32 8, %v939_v5  ;;  %v55_v15 = vmax.f32 %v25_v10, %v41_v13  ;;  %v29_v17 = vld [vmem:[#allocation2 + $0x32] ss:$2 sm:$0x3f]  ;;  %vm791_vm8 = vcmask 46080  }
  0x17   :  { %v950_v11 = vsub.s32 %v73_v4, %v939_v5  ;;  %v43_v18 = vld [vmem:[#allocation2 + $0x23] ss:$2 sm:$0x3f]  ;;  %v45_v19 = vld [vmem:[#allocation2 + $0x33] ss:$2 sm:$0x3f]  ;;  %v70_v20 = vcombine.high %v54_v14, %v54_v14 }
  0x18   :  { %v947_v8 = vadd.s32 1, %v941_v6  ;;  %v86_v22 = vcombine.high %v55_v15, %v55_v15  ;;  %v56_v24 = vmax.f32 %v27_v16, %v43_v18  ;;  %v57_v25 = vmax.f32 %v29_v17, %v45_v19  ;;  %v31_v26 = vld [vmem:[#allocation2 + $0x42] ss:$2 sm:$0x3f] }
  0x19   :  { %v77_v21 = vrot.slane %v54_v14, %v950_v11  ;;  %v93_v23 = vrot.slane %v55_v15, %v950_v11  ;;  %v47_v27 = vld [vmem:[#allocation2 + $0x43] ss:$2 sm:$0x3f]  ;;  %v84_v28 = vrot.slane %v70_v20, %v950_v11  ;;  %vm205_vm0 = vcmp.eq.s32.totalorder %v944_v7, %v941_v6  ;;  %v33_v36 = vld [vmem:[#allocation2 + $0x52] ss:$2 sm:$0x3f] }
  0x1a   :  { %v100_v31 = vrot.slane %v86_v22, %v950_v11  ;;  %v102_v32 = vcombine.high %v56_v24, %v56_v24  ;;  %v118_v33 = vcombine.high %v57_v25, %v57_v25  ;;  %v125_v34 = vrot.slane %v57_v25, %v950_v11  ;;  %v49_v37 = vld [vmem:[#allocation2 + $0x53] ss:$2 sm:$0x3f]  ;;  %v35_v46 = vld [vmem:[#allocation2 + $0x62] ss:$2 sm:$0x3f] }
  0x1b   :  { %v85_v29 = vcombine.high %v77_v21, %v77_v21  ;;  %v101_v30 = vcombine.high %v93_v23, %v93_v23  ;;  %v109_v35 = vrot.slane %v56_v24, %v950_v11  ;;  %v218_v39 = vcombine.low %v84_v28, %v93_v23  ;;  %v51_v47 = vld [vmem:[#allocation2 + $0x63] ss:$2 sm:$0x3f]  ;;  %v37_v60 = vld [vmem:[#allocation2 + $0x72] ss:$2 sm:$0x3f] }
  0x1c   :  { %v58_v41 = vmax.f32 %v31_v26, %v47_v27  ;;  %v116_v42 = vrot.slane %v102_v32, %v950_v11  ;;  %v132_v43 = vrot.slane %v118_v33, %v950_v11  ;;  %v133_v44 = vcombine.high %v125_v34, %v125_v34  ;;  %v53_v61 = vld [vmem:[#allocation2 + $0x73] ss:$2 sm:$0x3f] }
  0x1d   :  { %v217_v38 = vcombine.low %v77_v21, %v85_v29  ;;  %v234_v40 = vcombine.low %v101_v30, %v100_v31  ;;  %v117_v45 = vcombine.high %v109_v35, %v109_v35  ;;  %vm204_vm1 = vcmp.eq.s32.totalorder %v939_v5, %v941_v6 }
  0x1e   :  { %v232_v49 = vrot.slane %v218_v39, %v950_v11  ;;  %v59_v51 = vmax.f32 %v33_v36, %v49_v37  ;;  %vm211_vm2 = vcmp.eq.s32.totalorder %v939_v5, %v947_v8  ;;  %vm212_vm3 = vcmp.eq.s32.totalorder %v944_v7, %v947_v8  ;;  %vm868_vm5 = vmpackc.low %vm344_vm4, %vm204_vm1 }
  0x1f   :  { %v225_v48 = vrot.slane %v217_v38, %v950_v11  ;;  %v242_v50 = vrot.slane %v234_v40, %v950_v11  ;;  %v251_v52 = vcombine.low %v116_v42, %v125_v34  ;;  %v252_v53 = vcombine.low %v133_v44, %v132_v43  ;;  %vm874_vm6 = vmpackc.low %vm344_vm4, %vm211_vm2 }
  0x20   :  { %v235_v54 = vcombine.low %v109_v35, %v117_v45  ;;  %v134_v55 = vcombine.high %v58_v41, %v58_v41  ;;  %v141_v57 = vrot.slane %v58_v41, %v950_v11  ;;  %v157_v58 = vrot.slane %v59_v51, %v950_v11 }
  0x21   :  { %v233_v56 = vcombine.low %v225_v48, %v232_v49  ;;  %v60_v59 = vmax.f32 %v35_v46, %v51_v47  ;;  %v259_v62 = vrot.slane %v251_v52, %v950_v11  ;;  %v266_v63 = vrot.slane %v252_v53, %v950_v11 }
  0x22   :  { %v249_v0 = vrot.slane %v235_v54, %v950_v11  ;;  %v148_v1 = vrot.slane %v134_v55, %v950_v11  ;;  %v149_v2 = vcombine.high %v141_v57, %v141_v57  ;;  %v150_v3 = vcombine.high %v59_v51, %v59_v51 }
  0x23   :  { %319 = vrot.lane.b32.xlu0 %v233_v56, %s914_s0  ;;  %v165_v4 = vcombine.high %v157_v58, %v157_v58  ;;  %v173_v9 = vrot.slane %v60_v59, %v950_v11  ;;  %v267_v10 = vcombine.low %v259_v62, %v266_v63  ;;  %v61_v14 = vmax.f32 %v37_v60, %v53_v61 }
  0x24   :  { %v250_v12 = vcombine.low %v242_v50, %v249_v0  ;;  %v269_v13 = vcombine.low %v148_v1, %v157_v58  ;;  %v268_v15 = vcombine.low %v141_v57, %v149_v2  ;;  %v164_v16 = vrot.slane %v150_v3, %v950_v11 }
  0x25   :  { %v181_v17 = vcombine.high %v173_v9, %v173_v9  ;;  %v166_v18 = vcombine.high %v60_v59, %v60_v59  ;;  %323 = vrot.lane.b32.xlu1 %v267_v10, %s914_s0  ;;  %v182_v20 = vcombine.high %v61_v14, %v61_v14  ;;  %v189_v21 = vrot.slane %v61_v14, %v950_v11 }
  0x26   :  { %v283_v19 = vrot.slane %v269_v13, %v950_v11  ;;  %v915_v22 = vmov 0.0   ;;  %v276_v24 = vrot.slane %v268_v15, %v950_v11  ;;  %v285_v25 = vcombine.low %v165_v4, %v164_v16 }
  0x27   :  { %v806_v23 = vsel %vm205_vm0, 1.0, %v915_v22  ;;  %321 = vrot.lane.b32.xlu0 %v250_v12, %s914_s0  ;;  %v286_v26 = vcombine.low %v173_v9, %v181_v17  ;;  %v180_v27 = vrot.slane %v166_v18, %v950_v11  ;;  %v196_v28 = vrot.slane %v182_v20, %v950_v11 }
  0x28   :  { %v197_v29 = vcombine.high %v189_v21, %v189_v21  ;;  %v916_v30 = vmov 1.0   ;;  %v284_v32 = vcombine.low %v276_v24, %v283_v19  ;;  %v293_v33 = vrot.slane %v285_v25, %v950_v11 }
  0x29   :  { %v867_v31 = vpack.c.bf16 %v806_v23, %v916_v30  ;;  %v300_v34 = vrot.slane %v286_v26, %v950_v11  ;;  %v302_v35 = vcombine.low %v180_v27, %v189_v21  ;;  %v808_v37 = vsel %vm212_vm3, 1.0, %v915_v22 }
  0x2a   :  { %v303_v36 = vcombine.low %v197_v29, %v196_v28  ;;  %325 = vrot.lane.b32.xlu1 %v284_v32, %s914_s0  ;;  %v873_v40 = vpack.c.bf16 %v808_v37, %v916_v30 }
  0x2b   :  { %869 = vmatprep.subr.msk.bf16.mxu0 %vm868_vm5, %v867_v31  ;;  %v301_v38 = vcombine.low %v293_v33, %v300_v34  ;;  %v310_v39 = vrot.slane %v302_v35, %v950_v11 }
  0x2c   :  { %872 = vmatpush3.bf16.msk.msra.mxu0 %vm868_vm5, %v867_v31  ;;  %v317_v6 = vrot.slane %v303_v36, %v950_v11  ;;  %875 = vmatprep.subr.msk.bf16.mxu1 %vm874_vm6, %v873_v40 }
  0x2d   :  { %327 = vrot.lane.b32.xlu0 %v301_v38, %s914_s0  ;;  %878 = vmatpush3.bf16.msk.msra.mxu1 %vm874_vm6, %v873_v40 }
  0x2e   :  { %v318_v41 = vcombine.low %v310_v39, %v317_v6 }
  0x30   :  { %329 = vrot.lane.b32.xlu1 %v318_v41, %s914_s0 }
  0x95   :  { %v320_v7 = vpop.permute.xlu0 %319 }
  0x96   :  { %845 = vmatprep.mubr.msk.f32.mxu0 %vm331_vm7, %v320_v7  ;;  %858 = vmatprep.mubr.msk.f32.mxu1 %vm331_vm7, %v320_v7 }
  0x97   :  { %v324_v5 = vpop.permute.xlu1 %323 }
  0x99   :  { %v322_v8 = vpop.permute.xlu0 %321 }
  0x9a   :  { %846 = vmatmul.mubr.msk.f32.vlgmr.msra.gmra.mrb[0].mxu0 %vm331_vm7, %v322_v8  ;;  %859 = vmatmul.mubr.msk.f32.vlgmr.msra.gmra.mrb[0].mxu1 %vm331_vm7, %v322_v8 }
  0x9b   :  { %848 = vmatprep.mubr.msk.f32.mxu0 %vm331_vm7, %v324_v5  ;;  %861 = vmatprep.mubr.msk.f32.mxu1 %vm331_vm7, %v324_v5 }
  0x9c   :  { %v326_v42 = vpop.permute.xlu1 %325 }
  0x9e   :  { %849 = vmatmul.mubr.msk.f32.gmra.mrb[2].mxu0 %vm331_vm7, %v326_v42  ;;  %862 = vmatmul.mubr.msk.f32.gmra.mrb[2].mxu1 %vm331_vm7, %v326_v42 }
  0x9f   :  { %v328_v43 = vpop.permute.xlu0 %327 }
  0xa0   :  { %851 = vmatprep.mubr.msk.f32.mxu0 %vm331_vm7, %v328_v43  ;;  %864 = vmatprep.mubr.msk.f32.mxu1 %vm331_vm7, %v328_v43 }
  0xa2   :  { %v330_v44 = vpop.permute.xlu1 %329 }
  0xa3   :  { %852 = vmatmul.mubr.msk.f32.gmra.mrb[4].mxu0 %vm331_vm7, %v330_v44  ;;  %865 = vmatmul.mubr.msk.f32.gmra.mrb[4].mxu1 %vm331_vm7, %v330_v44 }
 0x16d   :  { %v847_v45 = vpop.f32.mrb[0].mxu0  ;;  %v860_v46 = vpop.f32.mrb[0].mxu1 }
 0x16e   :  { %v542_v47 = vmax.f32 %v847_v45, %v860_v46  ;;  %v414_v48 = vpop.f32.mrb[1].mxu0  ;;  %v512_v49 = vpop.f32.mrb[1].mxu1 }
 0x16f   :  { %v541_v50 = vmax.f32 %v414_v48, %v512_v49 }
 0x170   :  { %v570_v51 = vcombine.high %v542_v47, %v542_v47  ;;  %v577_v52 = vrot.slane %v542_v47, %v950_v11 }
 0x171   :  { %v553_v53 = vcombine.high %v541_v50, %v541_v50  ;;  %v560_v54 = vrot.slane %v541_v50, %v950_v11  ;;  %v850_v55 = vpop.f32.mrb[2].mxu0  ;;  %v863_v56 = vpop.f32.mrb[2].mxu1 }
 0x172   :  { %v584_v57 = vrot.slane %v570_v51, %v950_v11  ;;  %v585_v58 = vcombine.high %v577_v52, %v577_v52  ;;  %v544_v59 = vmax.f32 %v850_v55, %v863_v56  ;;  %v424_v60 = vpop.f32.mrb[3].mxu0  ;;  %v522_v61 = vpop.f32.mrb[3].mxu1 }
 0x173   :  { %v567_v62 = vrot.slane %v553_v53, %v950_v11  ;;  %v568_v63 = vcombine.high %v560_v54, %v560_v54  ;;  %v543_v0 = vmax.f32 %v424_v60, %v522_v61 }
 0x174   :  { %v586_v1 = vcombine.high %v584_v57, %v584_v57  ;;  %v685_v2 = vrot.slane %v585_v58, %v950_v11  ;;  %v604_v3 = vcombine.high %v544_v59, %v544_v59  ;;  %v611_v4 = vrot.slane %v544_v59, %v950_v11 }
 0x175   :  { %v569_v9 = vcombine.high %v567_v62, %v567_v62  ;;  %v655_v10 = vcombine.low %v560_v54, %v568_v63  ;;  %v669_v12 = vrot.slane %v567_v62, %v950_v11  ;;  %v587_v13 = vcombine.high %v543_v0, %v543_v0 }
 0x176   :  { %v687_v14 = vcombine.low %v584_v57, %v586_v1  ;;  %v618_v15 = vrot.slane %v604_v3, %v950_v11  ;;  %v619_v16 = vcombine.high %v611_v4, %v611_v4  ;;  %v594_v17 = vrot.slane %v543_v0, %v950_v11  ;;  %v853_v18 = vpop.f32.mrb[4].mxu0  ;;  %v866_v19 = vpop.f32.mrb[4].mxu1 }
 0x177   :  { %v662_v20 = vrot.slane %v655_v10, %v950_v11  ;;  %v671_v21 = vcombine.low %v569_v9, %v577_v52  ;;  %v601_v22 = vrot.slane %v587_v13, %v950_v11  ;;  %v546_v23 = vmax.f32 %v853_v18, %v866_v19  ;;  %v434_v24 = vpop.f32.mrb[5].mxu0  ;;  %v532_v25 = vpop.f32.mrb[5].mxu1 }
 0x178   :  { %v719_v26 = vcombine.low %v611_v4, %v619_v16  ;;  %v733_v27 = vrot.slane %v618_v15, %v950_v11  ;;  %v602_v28 = vcombine.high %v594_v17, %v594_v17  ;;  %v694_v29 = vrot.slane %v687_v14, %v950_v11 }
 0x179   :  { %v670_v30 = vcombine.low %v662_v20, %v669_v12  ;;  %v678_v31 = vrot.slane %v671_v21, %v950_v11  ;;  %v603_v32 = vcombine.high %v601_v22, %v601_v22  ;;  %v701_v33 = vrot.slane %v594_v17, %v950_v11 }
 0x17a   :  { %v726_v34 = vrot.slane %v719_v26, %v950_v11  ;;  %v703_v35 = vcombine.low %v602_v28, %v601_v22  ;;  %v638_v36 = vcombine.high %v546_v23, %v546_v23  ;;  %v645_v37 = vrot.slane %v546_v23, %v950_v11 }
 0x17b   :  { %v686_v38 = vcombine.low %v678_v31, %v685_v2  ;;  %792 = vst.msk [vmem:[%s1079_s1] sm:$0x3f] %vm791_vm8, %v670_v30  ;;  %v702_v39 = vcombine.low %v694_v29, %v701_v33  ;;  %v717_v40 = vrot.slane %v603_v32, %v950_v11  ;;  %v545_v6 = vmax.f32 %v434_v24, %v532_v25 }
 0x17c   :  { %v734_v41 = vcombine.low %v726_v34, %v733_v27  ;;  %v710_v7 = vrot.slane %v703_v35, %v950_v11  ;;  %v652_v5 = vrot.slane %v638_v36, %v950_v11  ;;  %v653_v8 = vcombine.high %v645_v37, %v645_v37 }
 0x17d   :  { %793 = vst.msk [vmem:[%s1079_s1 + $0x8] sm:$0x3f] %vm791_vm8, %v686_v38  ;;  %794 = vst.msk [vmem:[%s1079_s1 + $0x10] sm:$0x3f] %vm791_vm8, %v702_v39  ;;  %v620_v42 = vcombine.high %v618_v15, %v618_v15  ;;  %v621_v43 = vcombine.high %v545_v6, %v545_v6  ;;  %v628_v44 = vrot.slane %v545_v6, %v950_v11 }
 0x17e   :  { %796 = vst.msk [vmem:[%s1079_s1 + $0x20] sm:$0x3f] %vm791_vm8, %v734_v41  ;;  %v718_v45 = vcombine.low %v710_v7, %v717_v40  ;;  %v654_v46 = vcombine.high %v652_v5, %v652_v5  ;;  %v767_v47 = vcombine.low %v653_v8, %v652_v5  ;;  %v765_v59 = vrot.slane %v645_v37, %v950_v11 }
 0x17f   :  { %v635_v48 = vrot.slane %v621_v43, %v950_v11  ;;  %v636_v49 = vcombine.high %v628_v44, %v628_v44  ;;  %v735_v50 = vcombine.low %v620_v42, %v628_v44 }
 0x180   :  { %795 = vst.msk [vmem:[%s1079_s1 + $0x18] sm:$0x3f] %vm791_vm8, %v718_v45  ;;  %v774_v51 = vrot.slane %v767_v47, %v950_v11  ;;  %v781_v52 = vrot.slane %v654_v46, %v950_v11 }
 0x181   :  { %v637_v53 = vcombine.high %v635_v48, %v635_v48  ;;  %v742_v54 = vrot.slane %v735_v50, %v950_v11  ;;  %v749_v55 = vrot.slane %v636_v49, %v950_v11 }
 0x182   :  { %v782_v56 = vcombine.low %v774_v51, %v781_v52 }
 0x183   :  { %v750_v57 = vcombine.low %v742_v54, %v749_v55  ;;  %v751_v58 = vcombine.low %v635_v48, %v637_v53 }
 0x184   :  { %799 = vst.msk [vmem:[%s1079_s1 + $0x38] sm:$0x3f] %vm791_vm8, %v782_v56 }
 0x185   :  { %v758_v60 = vrot.slane %v751_v58, %v950_v11  ;;  %797 = vst.msk [vmem:[%s1079_s1 + $0x28] sm:$0x3f] %vm791_vm8, %v750_v57 }
 0x187   :  { %v766_v61 = vcombine.low %v758_v60, %v765_v59 }
 0x189   :  { %798 = vst.msk [vmem:[%s1079_s1 + $0x30] sm:$0x3f] %vm791_vm8, %v766_v61 }
 0x18a   :  { %804 = vsyncpa [#allocation3], 1 }

</bundles_post_ra>
